<compile_context>
chip_gen: v7x
topology: tpu7x:2x2x1
jax: 0.10.0
libtpu: 0.0.40
codegen_flags: <defaults>
</compile_context>

<pallas_src>
import numpy as np
import jax
import jax.numpy as jnp
from jax.experimental import pallas as pl
from jax.experimental.pallas import tpu as pltpu


def _round_up(x, m):
    return ((x + m - 1) // m) * m


def _choose_row_tile(m, block_m):
    """Row tile: multiple of 8 (sublane granule), <= block_m, and <= ceil(m/2)
    so the parallel grid axis has >= 2 tiles (v7x dual-TensorCore)."""
    tm = _round_up(m, 8)
    if m > 8:
        tm = min(tm, _round_up(-(-m // 2), 8))
    return max(8, min(block_m, tm))


def _linear_prelu_kernel(alpha_ref, x_ref, w_ref, b_ref, o_ref):
    # alpha_ref: (1,) f32 in SMEM (scalar prefetch, PReLU num_parameters=1)
    # x_ref: (tm, K) f32    w_ref: (K, N) bf16 (resident across the grid)
    # b_ref: (1, N) f32     o_ref: (tm, N) f32
    x_bf = x_ref[...].astype(jnp.bfloat16)          # in-kernel cast (VPU, free)
    y = jnp.dot(x_bf, w_ref[...], preferred_element_type=jnp.float32)
    y = y + b_ref[...]                               # bias broadcast (f32)
    a = alpha_ref[0]
    o_ref[...] = jnp.where(y >= 0.0, y, a * y).astype(o_ref.dtype)


def spatial_direct_forward(x, weight, bias, alpha, *, block_m=1024):
    """x: (..., in_dim) float32
       weight: (in_dim, out_channels)  (already transposed vs. PyTorch (out, in))
       bias:   (out_channels,)
       alpha:  scalar float (PReLU weight, num_parameters=1)
    """
    *lead, k = x.shape
    m = int(np.prod(lead)) if lead else 1
    if weight.ndim != 2 or weight.shape[0] != k:
        raise ValueError(
            f"weight must be (in_dim={k}, out_channels); got {weight.shape} "
            "(did you forget to transpose the PyTorch (out, in) layout?)")
    n = weight.shape[1]
    if bias.shape != (n,):
        raise ValueError(f"bias must be ({n},); got {bias.shape}")

    x2 = x.reshape(m, k)                              # f32, no cast, no pad
    w2 = weight.astype(jnp.bfloat16)                  # tiny, read once, resident
    b2 = bias.reshape(1, n).astype(jnp.float32)
    a2 = jnp.asarray(alpha, jnp.float32).reshape(1)

    tm = _choose_row_tile(m, block_m)
    grid_m = pl.cdiv(m, tm)                           # ragged last block masked

    x_bytes = x2.dtype.itemsize
    cost = pl.CostEstimate(
        flops=2 * m * k * n,
        bytes_accessed=(m * k * x_bytes               # x (f32)
                        + k * n * 2                   # weight (bf16)
                        + n * 4                       # bias (f32)
                        + m * n * 4),                 # out (f32)
        transcendentals=0,
    )

    out = pl.pallas_call(
        _linear_prelu_kernel,
        out_shape=jax.ShapeDtypeStruct((m, n), jnp.float32),
        grid_spec=pltpu.PrefetchScalarGridSpec(
            num_scalar_prefetch=1,                    # alpha -> SMEM
            grid=(grid_m,),
            in_specs=[
                pl.BlockSpec((tm, k), lambda i, alpha: (i, 0)),   # x tile
                pl.BlockSpec((k, n), lambda i, alpha: (0, 0)),    # weight (resident)
                pl.BlockSpec((1, n), lambda i, alpha: (0, 0)),    # bias   (resident)
            ],
            # N is the full feature dim -> output HBM bytes are exactly useful
            # bytes (no 128-lane zero padding / no wrapper slice copy).
            out_specs=pl.BlockSpec((tm, n), lambda i, alpha: (i, 0)),
        ),
        compiler_params=pltpu.CompilerParams(
            dimension_semantics=("parallel",),        # sharded over 2 TCs on v7x
            vmem_limit_bytes=32 * 1024 * 1024,        # safe on v5e/v6e/v7x
        ),
        cost_estimate=cost,
    )(a2, x2, w2, b2)

    return out.reshape(*lead, n)


if __name__ == "__main__":
    # Deterministic parameter / input construction (no checkpoint loading).
    inpt_dim = 32
    out_channels = 16
    batch, seq = 2, 8

    key = jax.random.PRNGKey(0)
    kx, kw, kb = jax.random.split(key, 3)

    # nn.Linear-style init (uniform in +/- 1/sqrt(fan_in)), deterministic here.
    bound = 1.0 / np.sqrt(inpt_dim)
    weight = jax.random.uniform(kw, (inpt_dim, out_channels),
                                minval=-bound, maxval=bound, dtype=jnp.float32)
    bias = jax.random.uniform(kb, (out_channels,),
                              minval=-bound, maxval=bound, dtype=jnp.float32)
    alpha = 0.25  # nn.PReLU() default init

    x = jax.random.normal(kx, (batch, seq, inpt_dim), dtype=jnp.float32)

    y = spatial_direct_forward(x, weight, bias, alpha)
    y = jax.block_until_ready(y)

    # Reference with the same bf16-matmul / f32-accumulate numerics.
    x_bf = x.reshape(-1, inpt_dim).astype(jnp.bfloat16)
    w_bf = weight.astype(jnp.bfloat16)
    ref = jnp.dot(x_bf, w_bf, preferred_element_type=jnp.float32) + bias
    ref = jnp.where(ref >= 0.0, ref, alpha * ref).reshape(batch, seq, out_channels)
    np.testing.assert_allclose(np.asarray(y), np.asarray(ref), rtol=1e-5, atol=1e-5)

    # Also sanity-check against the full-f32 math with a bf16-sized tolerance.
    ref32 = x.reshape(-1, inpt_dim) @ weight + bias
    ref32 = jnp.where(ref32 >= 0.0, ref32, alpha * ref32).reshape(batch, seq, out_channels)
    np.testing.assert_allclose(np.asarray(y), np.asarray(ref32), rtol=2e-2, atol=2e-2)

    assert y.shape == (batch, seq, out_channels)
    assert y.dtype == jnp.float32
    print("KERNEL_OK")
</pallas_src>

<mosaic_0001>
module attributes {stable_mosaic.version = 11 : i64} {
  func.func @_linear_prelu_kernel(%arg0: i32, %arg1: memref<1xf32, #tpu.memory_space<smem>>, %arg2: memref<8x32xf32, #tpu.memory_space<vmem>>, %arg3: memref<32x16xbf16, #tpu.memory_space<vmem>>, %arg4: memref<1x16xf32, #tpu.memory_space<vmem>>, %arg5: memref<8x16xf32, #tpu.memory_space<vmem>>) attributes {dimension_semantics = [#tpu.dimension_semantics<parallel>], iteration_bounds = array<i64: 2>, scalar_prefetch = 1 : i64, scratch_operands = 0 : i64, tpu.core_type = #tpu.core_type<tc>, window_params = [{transform_indices = @transform_0, window_bounds = array<i64: 8, 32>}, {pipeline_mode = #tpu.pipeline_mode<synchronous>, transform_indices = @transform_1, window_bounds = array<i64: 32, 16>}, {pipeline_mode = #tpu.pipeline_mode<synchronous>, transform_indices = @transform_2, window_bounds = array<i64: 1, 16>}, {transform_indices = @transform_3, window_bounds = array<i64: 8, 16>}]} {
    %c0 = arith.constant 0 : index
    %c0_0 = arith.constant 0 : index
    %0 = vector.load %arg2[%c0, %c0_0] : memref<8x32xf32, #tpu.memory_space<vmem>>, vector<8x32xf32>
    %1 = arith.truncf %0 : vector<8x32xf32> to vector<8x32xbf16>
    %c0_1 = arith.constant 0 : index
    %c0_2 = arith.constant 0 : index
    %2 = vector.load %arg3[%c0_1, %c0_2] : memref<32x16xbf16, #tpu.memory_space<vmem>>, vector<32x16xbf16>
    %cst = arith.constant dense<0.000000e+00> : vector<8x16xf32>
    %3 = tpu.matmul %1, %2, %cst {dimension_numbers = #tpu.dot_dimension_numbers<[1], [0], [0], [1], [0, 0, 1, 1], [], []>} : vector<8x32xbf16>, vector<32x16xbf16>, vector<8x16xf32> -> vector<8x16xf32>
    %c0_3 = arith.constant 0 : index
    %c0_4 = arith.constant 0 : index
    %4 = vector.load %arg4[%c0_3, %c0_4] : memref<1x16xf32, #tpu.memory_space<vmem>>, vector<1x16xf32>
    %5 = vector.broadcast %4 : vector<1x16xf32> to vector<8x16xf32>
    %6 = arith.addf %3, %5 : vector<8x16xf32>
    %c0_5 = arith.constant 0 : index
    %7 = memref.load %arg1[%c0_5] : memref<1xf32, #tpu.memory_space<smem>>
    %cst_6 = arith.constant 0.000000e+00 : f32
    %8 = vector.broadcast %cst_6 : f32 to vector<8x16xf32>
    %9 = arith.cmpf oge, %6, %8 : vector<8x16xf32>
    %10 = vector.broadcast %7 : f32 to vector<8x16xf32>
    %11 = arith.mulf %10, %6 : vector<8x16xf32>
    %12 = arith.select %9, %6, %11 : vector<8x16xi1>, vector<8x16xf32>
    %c0_7 = arith.constant 0 : index
    %c0_8 = arith.constant 0 : index
    %13 = vector.load %arg5[%c0_7, %c0_8] : memref<8x16xf32, #tpu.memory_space<vmem>>, vector<8x16xf32>
    tpu.vector_store %arg5[%c0_7, %c0_8], %12 {strides = array<i32>} : memref<8x16xf32, #tpu.memory_space<vmem>>, vector<8x16xf32>,
    return
  }
  func.func @transform_0(%arg0: i32, %arg1: memref<1xf32, #tpu.memory_space<smem>>) -> (i32, i32) {
    %c0_i32 = arith.constant 0 : i32
    %c0_i32_0 = arith.constant 0 : i32
    return %arg0, %c0_i32 : i32, i32
  }
  func.func @transform_1(%arg0: i32, %arg1: memref<1xf32, #tpu.memory_space<smem>>) -> (i32, i32) {
    %c0_i32 = arith.constant 0 : i32
    %c0_i32_0 = arith.constant 0 : i32
    %c0_i32_1 = arith.constant 0 : i32
    return %c0_i32, %c0_i32_0 : i32, i32
  }
  func.func @transform_2(%arg0: i32, %arg1: memref<1xf32, #tpu.memory_space<smem>>) -> (i32, i32) {
    %c0_i32 = arith.constant 0 : i32
    %c0_i32_0 = arith.constant 0 : i32
    %c0_i32_1 = arith.constant 0 : i32
    return %c0_i32, %c0_i32_0 : i32, i32
  }
  func.func @transform_3(%arg0: i32, %arg1: memref<1xf32, #tpu.memory_space<smem>>) -> (i32, i32) {
    %c0_i32 = arith.constant 0 : i32
    %c0_i32_0 = arith.constant 0 : i32
    return %arg0, %c0_i32 : i32, i32
  }
}

</mosaic_0001>

<bundles_post_ra>
// kernel: tpu_custom_call.1
= control target key start
LH: loop header
LB: loop body
LE: loop exit
PB: predicated region body
PF: predicated region fallthrough
CT: control target
= control target key end

     0   :  { %s590_s0 = inlined_call_operand.<no memory space> [shape: f32[1], index: 0, kind: input, shape index: {}]   ;;  %s591_s1 = inlined_call_operand.vmem [shape: f32[16,32], index: 1, kind: input, shape index: {}]   ;;  %s592_s2 = inlined_call_operand.vmem [shape: bf16[32,16], index: 2, kind: input, shape index: {}]   ;;  %s593_s3 = inlined_call_operand.vmem [shape: f32[1,16], index: 3, kind: input, shape index: {}]   ;;  %s594_s4 = inlined_call_operand.hbm [shape: f32[16,16], index: 4, kind: output, shape index: {}]  }
   0x1   :  { %9 = sst [smem:[#allocation3]] %s590_s0 }
   0x2   :  { %10 = vsyncpa [#allocation5], 0 }
   0x3   :  { %12 = vsyncpa [#allocation5 + $0x1], 0  ;;  %s481_s17 = smov 0   ;;  %s483_s18 = smov 0  }
   0x4   :  { %s485_s19 = smov 0   ;;  %s487_s20 = smov 0  }
   0x5 LB: > { %s502_s0 = sadd.s32 4294967295, %s448_s20   ;;  %s318_s21 = sadd.s32 4294967294, %s448_s20   ;;  %s448_s20 = sphi %s487_s20, %s600_s20   ;;  %s444_s19 = sphi %s485_s19, %s599_s19   ;;  %s440_s18 = sphi %s483_s18, %s598_s18   ;;  %s436_s17 = sphi %s481_s17, %s597_s17  }
   0x6   : > { %s506_s22 = sadd.s32 1, %s448_s20   ;;  %s93_s23 = sadd.s32 1, %s444_s19 }
   0x7   : > { %s90_s24 = ssub.s32 %s448_s20, %s506_s22  ;;  %p103_p0 = scmp.ne.s32.totalorder %s444_s19, %s440_s18 }
   0x8   : > { %p91_p1 = scmp.eq.s32.totalorder %s90_s24, 0  ;;  %p104_p2 = scmp.eq.s32.totalorder %s502_s0, 1 }
   0x9   : > { %p109_p3 = scmp.ne.s32.totalorder %s440_s18, %s436_s17  ;;  %p110_p4 = scmp.eq.s32.totalorder %s318_s21, 1 }
   0xa   : > { %s517_s25 = scalar_select %p91_p1, %s444_s19, %s93_s23  }
   0xb   : > { %p519_p5 = por %p104_p2, %p103_p0  ;;  %p523_p6 = por %p110_p4, %p109_p3 }
   0xc   : > { %p321_p7 = scmp.ge.s32.totalorder %s448_s20, 1  ;;  %p141_p8 = scmp.lt.s32.totalorder %s448_s20, 3 }
   0xe   : > { %p142_p9 = pnand %p321_p7, %p141_p8 }
   0xf   : > { %v384_v0 = vld [vmem:[%s592_s2] sm:$0xff] (!%p142_p9)   ;;  %v450_v1 = vmov (!%p142_p9), 0.0   ;;  %v385_v2 = vld [vmem:[%s592_s2 + $0x8] sm:$0xff] (!%p142_p9)   ;;  %vm451_vm0 = vmmov (!%p142_p9), 0   ;;  %p164_p10 = scmp.lt.s32.totalorder (!%p142_p9), %s502_s0, 1  ;;  %vm194_vm1 = vcmask (!%p142_p9), 261120  }
  0x10   : > { %145 = sbr.rel (%p142_p9) target bundleno = 261 (0x105), region = 32  ;;  %335 = vmatprep.subr.bf16.mxu0 (!%p142_p9), %v450_v1  ;;  %339 = vmatprep.mubr.msk.bf16.mxu0 (!%p142_p9), %vm451_vm0, %v450_v1  ;;  %s238_s11 = sld [smem:[#allocation3]] (!%p142_p9)  ;;  %v324_v5 = vld [vmem:[%s593_s3] ss:$0 sm:$0xff] (!%p142_p9)  ;;  %vm243_vm3 = vcmask (!%p142_p9), 130048  }
  0x11   : > { %336 = vmatpush3.bf16.msra.mxu0 (!%p142_p9), %v384_v0  ;;  %s161_s12 = sand.u32 (!%p142_p9), 1, %s440_s18   ;;  %s329_s16 = sshll.u32 (!%p142_p9), %s502_s0, 7 }
  0x12   : > { %337 = vmatprep.subr.bf16.mxu0 (!%p142_p9), %v450_v1  ;;  %s322_s13 = sshll.u32 (!%p142_p9), %s161_s12, 3  ;;  %s548_s29 = scalar_lea.hbm (!%p142_p9), %s594_s4, %s329_s16 }
  0x13   : > { %s163_s21 = scalar_lea.vmem (!%p142_p9), [#allocation4], %s322_s13  ;;  %s452_s5 = smov (!%p142_p9), [#allocation4]  }
  0x14   : > { %s259_s23 = sshll.u32 (!%p142_p9), %s163_s21, 4  ;;  %s550_s23 = int_to_ptr.vmem [resolvable:$true] %s259_s23 }
  0x15   : > { %338 = vmatpush3.bf16.msra.mxu0 (!%p142_p9), %v385_v2  ;;  %s386_s30 = scalar_lea.vmem (!%p142_p9), %s550_s23, 128 }
  0x16   : > { %v240_v7 = vstv (!%p142_p9), %s238_s11  ;;  %p387_p11 = scmp.ne.s32.totalorder (!%p142_p9), %s550_s23, %s386_s30 }
  0x17   : > { %s165_s6 = scalar_select %p164_p10, %s502_s0, 1 }
  0x18   : > { %s246_s0 = scalar_lea.sflag [#allocation5], %s161_s12  ;;  %p388_p12 = pnand %p387_p11, %p519_p5 }
  0x19   : > { %s323_s7 = sshll.u32 %s165_s6, 3  ;;  %s390_s6 = sshll.u32 %s452_s5, 4  ;;  %s391_s6 = int_to_ptr.vmem [resolvable:$false] %s390_s6 }
  0x1a   : > { %s167_s10 = scalar_lea.vmem %s591_s1, %s323_s7  ;;  %p389_p13 = pneg %p388_p12 }
  0x1b   : > { %v169_v3 = vld [vmem:[%s167_s10] sm:$0xff]  ;;  %s392_s7 = scalar_lea.vmem %s391_s6, 256  ;;  %p393_p0 = scmp.lt.s32.totalorder %s550_s23, %s391_s6 }
  0x1c   : > { %v170_v4 = vpack.c.bf16 %v169_v3, %v169_v3  ;;  %p394_p1 = scmp.lt.s32.totalorder %s392_s7, %s386_s30 }
  0x1e   : > { %340 = vmatmul.mubr.msk.bf16.vlgmr.msra.gmra.mrb[0].mxu0 %vm194_vm1, %v170_v4  ;;  %p395_p2 = por %p394_p1, %p393_p0 }
  0x20   : > { %p396_p3 = pnand %p395_p2, %p389_p13 }
  0xf1   : > { %v232_v6 = vpop.f32.mrb[0].mxu0 }
  0xf2   : > { %v233_v8 = vadd.f32 %v324_v5, %v232_v6  ;;  %v341_v9 = vpop.f32.mrb[1].mxu0 }
  0xf3   : > { %v235_v10 = vpop.f32.mrb[2].mxu0 }
  0xf4   : > { %vm239_vm2 = vcmp.ge.f32.partialorder %v233_v8, 0.0  ;;  %v241_v11 = vmul.f32 %v240_v7, %v233_v8  ;;  %v342_v12 = vpop.f32.mrb[3].mxu0 }
  0xf6   : > { %v242_v13 = vsel %vm239_vm2, %v233_v8, %v241_v11 }
  0xf7   : > { %244 = vst.msk [vmem:[%s163_s21] sm:$0xff] %vm243_vm3, %v242_v13 }
  0xf8   : > { %399 = shalt.err (!%p396_p3)
}
  0xf9   : > { %s400_s8 = scalar_lea.hbm %s548_s29, 128  ;;  %s404_s11 = scalar_lea.hbm %s594_s4, 256 }
  0xfa   : > { %p401_p4 = scmp.ne.s32.totalorder %s548_s29, %s400_s8  ;;  %p405_p9 = scmp.lt.u32.totalorder %s548_s29, %s594_s4 }
  0xfb   : > { %p406_p10 = scmp.lt.u32.totalorder %s404_s11, %s400_s8  ;;  %p408_p12 = scmp.lt.u32.totalorder %s400_s8, %s548_s29 }
  0xfc   : > { %p402_p7 = pnand %p401_p4, %p519_p5 }
  0xfd   : > { %p407_p11 = por %p406_p10, %p405_p9 }
  0xfe   : > { %p403_p8 = pneg %p402_p7 }
  0xff   : > { %p409_p13 = por %p408_p12, %p407_p11 }
 0x101   : > { %p410_p0 = pnand %p409_p13, %p403_p8 }
 0x103   : > { %413 = shalt.err (!%p410_p0)
}
 0x104   : > { %343 = dma.vmem_to_hbm [thread:$0]  (%p519_p5), %s550_s23, 128, %s548_s29, %s246_s0  }
 0x105 PF: > { %p349_p1 = scmp.ge.s32.totalorder %s448_s20, 2  ;;  %s271_s14 = sand.u32 1, %s436_s17  }
 0x106   : > { %s272_s15 = scalar_lea.sflag [#allocation5], %s271_s14 }
 0x107   : > { %p346_p2 = pnand %p349_p1, %p523_p6 }
 0x109   : > { %431 = dma.done.wait (!%p346_p2), %s272_s15, 128  }
 0x10a   : > { %433 = vsyncadd (!%p346_p2), %s272_s15, 4294967168  ;;  %p15_p3 = scmp.ge.s32.totalorder %s506_s22, 4   ;;  %s597_s17 = smov %s440_s18 }
 0x10b   : > { %s598_s18 = smov %s444_s19  ;;  %s599_s19 = smov %s517_s25 }
 0x10c   : > { %s600_s20 = smov %s506_s22  ;;  %17 = sbr.rel (!%p15_p3) target bundleno = 5 (0x5), region = 67 }
 0x113   :  { %277 = vsyncpa [#allocation5], 1 }
 0x114   :  { %279 = vsyncpa [#allocation5 + $0x1], 1 }

</bundles_post_ra>
